<compile_context>
chip_gen: v6e
topology: v6e:2x2x1
jax: 0.10.0
libtpu: 0.0.40
codegen_flags: <defaults>
</compile_context>

<pallas_src>
import functools

import jax
import jax.numpy as jnp
from jax.experimental import pallas as pl
from jax.experimental.pallas import tpu as pltpu

IN_FEATURES = 5
HIDDEN = 512
OUT_FEATURES = 8
OUT_PADDED = 128                       # lane-dense output width; cols [8:128] are zero
DROPOUT_P = 0.5
KEEP_SCALE = 1.0 / (1.0 - DROPOUT_P)   # 2.0
LEAKY_SLOPE = 0.01                     # F.leaky_relu default negative_slope


def _hash_u32(x):
    """Murmur3-style 32-bit finalizer. Pure jnp ops -> portable everywhere."""
    x = x ^ (x >> jnp.uint32(16))
    x = x * jnp.uint32(0x7FEB352D)
    x = x ^ (x >> jnp.uint32(15))
    x = x * jnp.uint32(0x846CA68B)
    x = x ^ (x >> jnp.uint32(16))
    return x


def _dnn_kernel(seed_ref, x_ref, w1_ref, b1_ref, w2_ref, b2_ref, o_ref, *, tile_b):
    # ---- layer 1: (tile_b, 5) @ (5, 512) as 5 VPU outer-product FMAs --------
    # K=5 is far too small for the MXU (contraction pads to 128, <=4% util and
    # a lane-sparse LHS relayout); accumulate rank-1 updates on the VPU instead.
    x = x_ref[...]                                     # (tile_b, 5)  f32
    w1 = w1_ref[...]                                   # (5, 512)     f32
    h = x[:, 0:1] * w1[0:1, :]
    for k in range(1, IN_FEATURES):                    # static, fully unrolled
        h = h + x[:, k:k + 1] * w1[k:k + 1, :]
    h = h + b1_ref[...]                                # (1, 512) broadcast add

    # ---- dropout(p=0.5) + leaky_relu, fused into one select chain -----------
    # Counter-based PRNG: hash(seed, global element index). The global index
    # includes the grid position, so each batch tile draws a distinct mask.
    seed_u = seed_ref[0].astype(jnp.uint32)
    base = (pl.program_id(0) * (tile_b * HIDDEN)).astype(jnp.uint32)
    rows = jax.lax.broadcasted_iota(jnp.int32, (tile_b, HIDDEN), 0).astype(jnp.uint32)
    cols = jax.lax.broadcasted_iota(jnp.int32, (tile_b, HIDDEN), 1).astype(jnp.uint32)
    idx = base + rows * jnp.uint32(HIDDEN) + cols
    bits = _hash_u32(idx + seed_u * jnp.uint32(0x9E3779B1))
    keep = (bits & jnp.uint32(1)) == jnp.uint32(0)     # fair coin per element
    h = jnp.where(
        keep,
        jnp.where(h > 0.0, h * KEEP_SCALE, h * (KEEP_SCALE * LEAKY_SLOPE)),
        0.0,
    )

    # ---- layer 2: (tile_b, 512) @ (512, 128) on the MXU (lane-dense) --------
    out = jnp.dot(h, w2_ref[...], preferred_element_type=jnp.float32)
    o_ref[...] = (out + b2_ref[...]).astype(o_ref.dtype)


def dnn_forward(x, w1, b1, w2, b2, seed, *, block_rows=1024):
    """x: (batch, 5) f32, w1: (5, 512), b1: (1, 512), w2: (512, 8), b2: (1, 8),
    seed: (1,) int32.  Returns (batch, 8) f32."""
    batch = x.shape[0]

    # Lane-dense output: zero-pad W2 / b2 to 128 output lanes (bit-identical in
    # the first 8 columns); slice the real columns back after the kernel.
    w2p = jnp.zeros((HIDDEN, OUT_PADDED), jnp.float32).at[:, :OUT_FEATURES].set(w2)
    b2p = jnp.zeros((1, OUT_PADDED), jnp.float32).at[:, :OUT_FEATURES].set(b2)

    # Batch tile: multiple of 8 (sublane constraint), capped at block_rows.
    tile_b = min(block_rows, max(8, ((batch + 7) // 8) * 8))
    padded = ((batch + tile_b - 1) // tile_b) * tile_b
    if padded != batch:
        x = jnp.pad(x, ((0, padded - batch), (0, 0)))
    grid = (padded // tile_b,)

    flops = 2 * padded * (IN_FEATURES * HIDDEN + HIDDEN * OUT_PADDED)
    bytes_accessed = 4 * (
        padded * IN_FEATURES + padded * OUT_PADDED
        + IN_FEATURES * HIDDEN + HIDDEN + HIDDEN * OUT_PADDED + OUT_PADDED
    )

    kernel = functools.partial(_dnn_kernel, tile_b=tile_b)

    out_padded = pl.pallas_call(
        kernel,
        out_shape=jax.ShapeDtypeStruct((padded, OUT_PADDED), jnp.float32),
        grid_spec=pltpu.PrefetchScalarGridSpec(
            num_scalar_prefetch=1,                 # seed -> SMEM
            grid=grid,
            in_specs=[
                pl.BlockSpec((tile_b, IN_FEATURES), lambda i, s: (i, 0)),   # x tile
                pl.BlockSpec((IN_FEATURES, HIDDEN), lambda i, s: (0, 0)),   # w1 resident
                pl.BlockSpec((1, HIDDEN),           lambda i, s: (0, 0)),   # b1 resident
                pl.BlockSpec((HIDDEN, OUT_PADDED),  lambda i, s: (0, 0)),   # w2 resident
                pl.BlockSpec((1, OUT_PADDED),       lambda i, s: (0, 0)),   # b2 resident
            ],
            out_specs=pl.BlockSpec((tile_b, OUT_PADDED), lambda i, s: (i, 0)),
        ),
        compiler_params=pltpu.CompilerParams(
            dimension_semantics=("parallel",),     # shard batch tiles across TCs on v7x
        ),
        cost_estimate=pl.CostEstimate(
            flops=flops, transcendentals=0, bytes_accessed=bytes_accessed
        ),
    )(seed, x, w1, b1, w2p, b2p)

    return out_padded[:batch, :OUT_FEATURES]


def init_params(key):
    """Deterministic init mimicking torch.nn.Linear defaults:
    U(-1/sqrt(fan_in), 1/sqrt(fan_in)) for both weight and bias.
    Weights stored as (in_features, out_features)."""
    k1, k2, k3, k4 = jax.random.split(key, 4)
    bound1 = 1.0 / jnp.sqrt(jnp.float32(IN_FEATURES))
    bound2 = 1.0 / jnp.sqrt(jnp.float32(HIDDEN))
    w1 = jax.random.uniform(k1, (IN_FEATURES, HIDDEN), jnp.float32, -bound1, bound1)
    b1 = jax.random.uniform(k2, (1, HIDDEN), jnp.float32, -bound1, bound1)
    w2 = jax.random.uniform(k3, (HIDDEN, OUT_FEATURES), jnp.float32, -bound2, bound2)
    b2 = jax.random.uniform(k4, (1, OUT_FEATURES), jnp.float32, -bound2, bound2)
    return w1, b1, w2, b2


if __name__ == "__main__":
    key = jax.random.PRNGKey(0)
    pkey, xkey = jax.random.split(key)

    w1, b1, w2, b2 = init_params(pkey)

    batch = 8
    x = jax.random.normal(xkey, (batch, IN_FEATURES), jnp.float32)
    seed = jnp.array([1234], dtype=jnp.int32)

    out = dnn_forward(x, w1, b1, w2, b2, seed)
    out = jax.block_until_ready(out)

    assert out.shape == (batch, OUT_FEATURES)
    assert out.dtype == jnp.float32
    assert bool(jnp.all(jnp.isfinite(out)))
    print("KERNEL_OK")
</pallas_src>

<mosaic_0001>
module attributes {stable_mosaic.version = 11 : i64} {
  func.func @_dnn_kernel(%arg0: i32, %arg1: memref<1xi32, #tpu.memory_space<smem>>, %arg2: memref<8x5xf32, #tpu.memory_space<vmem>>, %arg3: memref<5x512xf32, #tpu.memory_space<vmem>>, %arg4: memref<1x512xf32, #tpu.memory_space<vmem>>, %arg5: memref<512x128xf32, #tpu.memory_space<vmem>>, %arg6: memref<1x128xf32, #tpu.memory_space<vmem>>, %arg7: memref<8x128xf32, #tpu.memory_space<vmem>>) attributes {dimension_semantics = [#tpu.dimension_semantics<parallel>], iteration_bounds = array<i64: 1>, scalar_prefetch = 1 : i64, scratch_operands = 0 : i64, tpu.core_type = #tpu.core_type<tc>, window_params = [{transform_indices = @transform_0, window_bounds = array<i64: 8, 5>}, {pipeline_mode = #tpu.pipeline_mode<synchronous>, transform_indices = @transform_1, window_bounds = array<i64: 5, 512>}, {pipeline_mode = #tpu.pipeline_mode<synchronous>, transform_indices = @transform_2, window_bounds = array<i64: 1, 512>}, {pipeline_mode = #tpu.pipeline_mode<synchronous>, transform_indices = @transform_3, window_bounds = array<i64: 512, 128>}, {pipeline_mode = #tpu.pipeline_mode<synchronous>, transform_indices = @transform_4, window_bounds = array<i64: 1, 128>}, {transform_indices = @transform_5, window_bounds = array<i64: 8, 128>}]} {
    %c0 = arith.constant 0 : index
    %c0_0 = arith.constant 0 : index
    %0 = vector.load %arg2[%c0, %c0_0] : memref<8x5xf32, #tpu.memory_space<vmem>>, vector<8x5xf32>
    %c0_1 = arith.constant 0 : index
    %c0_2 = arith.constant 0 : index
    %1 = vector.load %arg3[%c0_1, %c0_2] : memref<5x512xf32, #tpu.memory_space<vmem>>, vector<5x512xf32>
    %2 = vector.extract_strided_slice %0 {offsets = [0, 0], sizes = [8, 1], strides = [1, 1]} : vector<8x5xf32> to vector<8x1xf32>
    %3 = vector.extract_strided_slice %1 {offsets = [0, 0], sizes = [1, 512], strides = [1, 1]} : vector<5x512xf32> to vector<1x512xf32>
    %4 = vector.broadcast %2 : vector<8x1xf32> to vector<8x512xf32>
    %5 = vector.broadcast %3 : vector<1x512xf32> to vector<8x512xf32>
    %6 = arith.mulf %4, %5 : vector<8x512xf32>
    %7 = vector.extract_strided_slice %0 {offsets = [0, 1], sizes = [8, 1], strides = [1, 1]} : vector<8x5xf32> to vector<8x1xf32>
    %8 = vector.extract_strided_slice %1 {offsets = [1, 0], sizes = [1, 512], strides = [1, 1]} : vector<5x512xf32> to vector<1x512xf32>
    %9 = vector.broadcast %7 : vector<8x1xf32> to vector<8x512xf32>
    %10 = vector.broadcast %8 : vector<1x512xf32> to vector<8x512xf32>
    %11 = arith.mulf %9, %10 : vector<8x512xf32>
    %12 = arith.addf %6, %11 : vector<8x512xf32>
    %13 = vector.extract_strided_slice %0 {offsets = [0, 2], sizes = [8, 1], strides = [1, 1]} : vector<8x5xf32> to vector<8x1xf32>
    %14 = vector.extract_strided_slice %1 {offsets = [2, 0], sizes = [1, 512], strides = [1, 1]} : vector<5x512xf32> to vector<1x512xf32>
    %15 = vector.broadcast %13 : vector<8x1xf32> to vector<8x512xf32>
    %16 = vector.broadcast %14 : vector<1x512xf32> to vector<8x512xf32>
    %17 = arith.mulf %15, %16 : vector<8x512xf32>
    %18 = arith.addf %12, %17 : vector<8x512xf32>
    %19 = vector.extract_strided_slice %0 {offsets = [0, 3], sizes = [8, 1], strides = [1, 1]} : vector<8x5xf32> to vector<8x1xf32>
    %20 = vector.extract_strided_slice %1 {offsets = [3, 0], sizes = [1, 512], strides = [1, 1]} : vector<5x512xf32> to vector<1x512xf32>
    %21 = vector.broadcast %19 : vector<8x1xf32> to vector<8x512xf32>
    %22 = vector.broadcast %20 : vector<1x512xf32> to vector<8x512xf32>
    %23 = arith.mulf %21, %22 : vector<8x512xf32>
    %24 = arith.addf %18, %23 : vector<8x512xf32>
    %25 = vector.extract_strided_slice %0 {offsets = [0, 4], sizes = [8, 1], strides = [1, 1]} : vector<8x5xf32> to vector<8x1xf32>
    %26 = vector.extract_strided_slice %1 {offsets = [4, 0], sizes = [1, 512], strides = [1, 1]} : vector<5x512xf32> to vector<1x512xf32>
    %27 = vector.broadcast %25 : vector<8x1xf32> to vector<8x512xf32>
    %28 = vector.broadcast %26 : vector<1x512xf32> to vector<8x512xf32>
    %29 = arith.mulf %27, %28 : vector<8x512xf32>
    %30 = arith.addf %24, %29 : vector<8x512xf32>
    %c0_3 = arith.constant 0 : index
    %c0_4 = arith.constant 0 : index
    %31 = vector.load %arg4[%c0_3, %c0_4] : memref<1x512xf32, #tpu.memory_space<vmem>>, vector<1x512xf32>
    %32 = vector.broadcast %31 : vector<1x512xf32> to vector<8x512xf32>
    %33 = arith.addf %30, %32 : vector<8x512xf32>
    %c0_5 = arith.constant 0 : index
    %34 = memref.load %arg1[%c0_5] : memref<1xi32, #tpu.memory_space<smem>>
    %c4096_i32 = arith.constant 4096 : i32
    %35 = arith.muli %arg0, %c4096_i32 : i32
    %36 = tpu.iota {dimensions = array<i32: 0>} : vector<8x512xi32>
    %37 = tpu.iota {dimensions = array<i32: 1>} : vector<8x512xi32>
    %c512_i32 = arith.constant 512 : i32
    %38 = vector.broadcast %c512_i32 : i32 to vector<8x512xi32>
    %39 = arith.muli %36, %38 : vector<8x512xi32>
    %40 = vector.broadcast %35 : i32 to vector<8x512xi32>
    %41 = arith.addi %40, %39 : vector<8x512xi32>
    %42 = arith.addi %41, %37 : vector<8x512xi32>
    %c-1640531535_i32 = arith.constant -1640531535 : i32
    %43 = arith.muli %34, %c-1640531535_i32 : i32
    %44 = vector.broadcast %43 : i32 to vector<8x512xi32>
    %45 = arith.addi %42, %44 : vector<8x512xi32>
    %c16_i32 = arith.constant 16 : i32
    %46 = vector.broadcast %c16_i32 : i32 to vector<8x512xi32>
    %47 = arith.shrui %45, %46 : vector<8x512xi32>
    %48 = arith.xori %45, %47 : vector<8x512xi32>
    %c2146121005_i32 = arith.constant 2146121005 : i32
    %49 = vector.broadcast %c2146121005_i32 : i32 to vector<8x512xi32>
    %50 = arith.muli %48, %49 : vector<8x512xi32>
    %c15_i32 = arith.constant 15 : i32
    %51 = vector.broadcast %c15_i32 : i32 to vector<8x512xi32>
    %52 = arith.shrui %50, %51 : vector<8x512xi32>
    %53 = arith.xori %50, %52 : vector<8x512xi32>
    %c-2073254261_i32 = arith.constant -2073254261 : i32
    %54 = vector.broadcast %c-2073254261_i32 : i32 to vector<8x512xi32>
    %55 = arith.muli %53, %54 : vector<8x512xi32>
    %c16_i32_6 = arith.constant 16 : i32
    %56 = vector.broadcast %c16_i32_6 : i32 to vector<8x512xi32>
    %57 = arith.shrui %55, %56 : vector<8x512xi32>
    %58 = arith.xori %55, %57 : vector<8x512xi32>
    %c1_i32 = arith.constant 1 : i32
    %59 = vector.broadcast %c1_i32 : i32 to vector<8x512xi32>
    %60 = arith.andi %58, %59 : vector<8x512xi32>
    %c0_i32 = arith.constant 0 : i32
    %61 = vector.broadcast %c0_i32 : i32 to vector<8x512xi32>
    %62 = arith.cmpi eq, %60, %61 : vector<8x512xi32>
    %cst = arith.constant 0.000000e+00 : f32
    %63 = vector.broadcast %cst : f32 to vector<8x512xf32>
    %64 = arith.cmpf ogt, %33, %63 : vector<8x512xf32>
    %cst_7 = arith.constant 2.000000e+00 : f32
    %65 = vector.broadcast %cst_7 : f32 to vector<8x512xf32>
    %66 = arith.mulf %33, %65 : vector<8x512xf32>
    %cst_8 = arith.constant 2.000000e-02 : f32
    %67 = vector.broadcast %cst_8 : f32 to vector<8x512xf32>
    %68 = arith.mulf %33, %67 : vector<8x512xf32>
    %69 = arith.select %64, %66, %68 : vector<8x512xi1>, vector<8x512xf32>
    %cst_9 = arith.constant 0.000000e+00 : f32
    %70 = vector.broadcast %cst_9 : f32 to vector<8x512xf32>
    %71 = arith.select %62, %69, %70 : vector<8x512xi1>, vector<8x512xf32>
    %c0_10 = arith.constant 0 : index
    %c0_11 = arith.constant 0 : index
    %72 = vector.load %arg5[%c0_10, %c0_11] : memref<512x128xf32, #tpu.memory_space<vmem>>, vector<512x128xf32>
    %cst_12 = arith.constant dense<0.000000e+00> : vector<8x128xf32>
    %73 = tpu.matmul %71, %72, %cst_12 {dimension_numbers = #tpu.dot_dimension_numbers<[1], [0], [0], [1], [0, 0, 1, 1], [], []>} : vector<8x512xf32>, vector<512x128xf32>, vector<8x128xf32> -> vector<8x128xf32>
    %c0_13 = arith.constant 0 : index
    %c0_14 = arith.constant 0 : index
    %74 = vector.load %arg6[%c0_13, %c0_14] : memref<1x128xf32, #tpu.memory_space<vmem>>, vector<1x128xf32>
    %75 = vector.broadcast %74 : vector<1x128xf32> to vector<8x128xf32>
    %76 = arith.addf %73, %75 : vector<8x128xf32>
    %c0_15 = arith.constant 0 : index
    %c0_16 = arith.constant 0 : index
    %77 = vector.load %arg7[%c0_15, %c0_16] : memref<8x128xf32, #tpu.memory_space<vmem>>, vector<8x128xf32>
    tpu.vector_store %arg7[%c0_15, %c0_16], %76 {strides = array<i32>} : memref<8x128xf32, #tpu.memory_space<vmem>>, vector<8x128xf32>,
    return
  }
  func.func @transform_0(%arg0: i32, %arg1: memref<1xi32, #tpu.memory_space<smem>>) -> (i32, i32) {
    %c0_i32 = arith.constant 0 : i32
    %c0_i32_0 = arith.constant 0 : i32
    return %arg0, %c0_i32 : i32, i32
  }
  func.func @transform_1(%arg0: i32, %arg1: memref<1xi32, #tpu.memory_space<smem>>) -> (i32, i32) {
    %c0_i32 = arith.constant 0 : i32
    %c0_i32_0 = arith.constant 0 : i32
    %c0_i32_1 = arith.constant 0 : i32
    return %c0_i32, %c0_i32_0 : i32, i32
  }
  func.func @transform_2(%arg0: i32, %arg1: memref<1xi32, #tpu.memory_space<smem>>) -> (i32, i32) {
    %c0_i32 = arith.constant 0 : i32
    %c0_i32_0 = arith.constant 0 : i32
    %c0_i32_1 = arith.constant 0 : i32
    return %c0_i32, %c0_i32_0 : i32, i32
  }
  func.func @transform_3(%arg0: i32, %arg1: memref<1xi32, #tpu.memory_space<smem>>) -> (i32, i32) {
    %c0_i32 = arith.constant 0 : i32
    %c0_i32_0 = arith.constant 0 : i32
    %c0_i32_1 = arith.constant 0 : i32
    return %c0_i32, %c0_i32_0 : i32, i32
  }
  func.func @transform_4(%arg0: i32, %arg1: memref<1xi32, #tpu.memory_space<smem>>) -> (i32, i32) {
    %c0_i32 = arith.constant 0 : i32
    %c0_i32_0 = arith.constant 0 : i32
    %c0_i32_1 = arith.constant 0 : i32
    return %c0_i32, %c0_i32_0 : i32, i32
  }
  func.func @transform_5(%arg0: i32, %arg1: memref<1xi32, #tpu.memory_space<smem>>) -> (i32, i32) {
    %c0_i32 = arith.constant 0 : i32
    %c0_i32_0 = arith.constant 0 : i32
    return %arg0, %c0_i32 : i32, i32
  }
}

</mosaic_0001>

<bundles_post_ra>
// kernel: tpu_custom_call.1
= control target key start
LH: loop header
LB: loop body
LE: loop exit
PB: predicated region body
PF: predicated region fallthrough
CT: control target
= control target key end

     0   :  { %12 = vsyncpa [#allocation5], 0  ;;  %s874_s0 = inlined_call_operand.<no memory space> [shape: s32[1], index: 0, kind: input, shape index: {}]   ;;  %s875_s1 = inlined_call_operand.hbm [shape: f32[8,5], index: 1, kind: input, shape index: {}]   ;;  %s876_s2 = inlined_call_operand.hbm [shape: f32[5,512], index: 2, kind: input, shape index: {}]   ;;  %s877_s3 = inlined_call_operand.vmem [shape: f32[1,512], index: 3, kind: input, shape index: {}]   ;;  %s878_s4 = inlined_call_operand.hbm [shape: f32[512,128], index: 4, kind: input, shape index: {}]   ;;  %s879_s5 = inlined_call_operand.vmem [shape: f32[1,128], index: 5, kind: input, shape index: {}]   ;;  %s880_s6 = inlined_call_operand.hbm [shape: f32[8,128], index: 6, kind: output, shape index: {}]  }
   0x1   :  { %13 = vsyncpa [#allocation8], 0 }
   0x2   :  { %14 = vsyncpa [#allocation6], 0  ;;  %s716_s21 = smov [#allocation7]   ;;  %s717_s23 = smov [#allocation4]  }
   0x3   :  { %s31_s22 = sshll.u32 %s716_s21, 4  ;;  %s21_s24 = sshll.u32 %s717_s23, 4  ;;  %s32_s22 = int_to_ptr.vmem [resolvable:$true] %s31_s22  ;;  %s22_s24 = int_to_ptr.vmem [resolvable:$true] %s21_s24 }
   0x4   :  { %s638_s25 = scalar_lea.vmem %s32_s22, 512  ;;  %p643_p1 = scmp.lt.s32.totalorder %s32_s22, %s32_s22 }
   0x5   :  { %p639_p0 = scmp.ne.s32.totalorder %s32_s22, %s638_s25  ;;  %p644_p2 = scmp.lt.s32.totalorder %s638_s25, %s638_s25 }
   0x7   :  { %p645_p3 = por %p644_p2, %p643_p1 }
   0x9   :  { %p646_p4 = pnand %p645_p3, %p639_p0 }
   0xb   :  { %649 = shalt.err (!%p646_p4)
}
   0xc   :  { %34 = dma.hbm_to_vmem [thread:$0]  %s876_s2, 512, %s32_s22, [#allocation8]  }
   0xd   :  { %s658_s28 = scalar_lea.vmem %s22_s24, 128  ;;  %p663_p6 = scmp.lt.s32.totalorder %s22_s24, %s22_s24 }
   0xe   :  { %p659_p5 = scmp.ne.s32.totalorder %s22_s24, %s658_s28  ;;  %p664_p7 = scmp.lt.s32.totalorder %s658_s28, %s658_s28 }
  0x10   :  { %p665_p8 = por %p664_p7, %p663_p6 }
  0x12   :  { %p666_p9 = pnand %p665_p8, %p659_p5 }
  0x14   :  { %669 = shalt.err (!%p666_p9)
}
  0x15   :  { %24 = dma.hbm_to_vmem [thread:$0]  %s875_s1, 128, %s22_s24, [#allocation5]  }
  0x16   :  { %s718_s7 = smov [#allocation9]  }
  0x17   :  { %s42_s8 = sshll.u32 %s718_s7, 4  ;;  %s43_s8 = int_to_ptr.vmem [resolvable:$true] %s42_s8 }
  0x18   :  { %s678_s9 = scalar_lea.vmem %s43_s8, 8192  ;;  %p683_p11 = scmp.lt.s32.totalorder %s43_s8, %s43_s8 }
  0x19   :  { %p679_p10 = scmp.ne.s32.totalorder %s43_s8, %s678_s9  ;;  %p684_p12 = scmp.lt.s32.totalorder %s678_s9, %s678_s9 }
  0x1b   :  { %p685_p13 = por %p684_p12, %p683_p11 }
  0x1d   :  { %p686_p0 = pnand %p685_p13, %p679_p10 }
  0x1f   :  { %689 = shalt.err (!%p686_p0)
}
  0x20   :  { %s719_s2 = smov 128   ;;  %s720_s10 = smov 8  }
  0x21   :  { %48 = dma.hbm_to_vmem [thread:$0]  %s878_s4, 8192, %s43_s8, [#allocation8], %s719_s2, %s719_s2, %s720_s10  }
  0x22   :  { %710 = dma.done.wait [#allocation5], 128  }
  0x23   :  { %711 = vsyncadd [#allocation5], 4294967168 }
  0x24   :  { %712 = dma.done.wait [#allocation8], 8704  }
  0x25   :  { %713 = vsyncadd [#allocation8], 4294958592  ;;  %v721_v0 = vmov 0   ;;  %v722_v1 = vmov 2   ;;  %v60_v2 = vld [vmem:[#allocation4] sm:$0xff]  ;;  %v340_v7 = vld [vmem:[#allocation9 + $0xf0] sm:$0xff] }
  0x26   :  { %624 = vset.pattern.permute.xlu0 %v721_v0  ;;  %626 = vset.pattern.permute.xlu1 %v722_v1  ;;  %v341_v3 = vld [vmem:[#allocation9 + $0xf8] sm:$0xff]  ;;  %v372_v8 = vld [vmem:[#allocation9 + $0x1f0] sm:$0xff]  ;;  %v723_v11 = vmov 1   ;;  %v724_v12 = vmov 3   ;;  %v339_v13 = vld [vmem:[#allocation9 + $0xe8] sm:$0xff]  ;;  %v725_v21 = vmov 4  }
  0x27   :  { %v373_v4 = vld [vmem:[#allocation9 + $0x1f8] sm:$0xff]  ;;  %67 = vperm.xlu0 %624, %v60_v2   ;;  %119 = vperm.xlu1 %626, %v60_v2   ;;  %v324_v9 = vld [vmem:[#allocation9 + $0x70] sm:$0xff]  ;;  %v371_v14 = vld [vmem:[#allocation9 + $0x1e8] sm:$0xff]  ;;  %s244_s13 = smul.u32 2654435761, %s874_s0  ;;  %s726_s16 = smov [#allocation10]  }
  0x28   :  { %v325_v5 = vld [vmem:[#allocation9 + $0x78] sm:$0xff]  ;;  %543 = vmatprep.subr.mxu0 %v341_v3  ;;  %578 = vmatprep.subr.mxu1 %v373_v4  ;;  %v356_v10 = vld [vmem:[#allocation9 + $0x170] sm:$0xff]  ;;  %v323_v15 = vld [vmem:[#allocation9 + $0x68] sm:$0xff]  ;;  %s528_s17 = sshll.u32 %s726_s16, 4  ;;  %s529_s17 = int_to_ptr.vmem [resolvable:$true] %s528_s17 }
  0x29   :  { %v357_v6 = vld [vmem:[#allocation9 + $0x178] sm:$0xff]  ;;  %544 = vmatpush3.msra.mxu0 %v325_v5  ;;  %v355_v16 = vld [vmem:[#allocation9 + $0x168] sm:$0xff]  ;;  %v338_v17 = vld [vmem:[#allocation9 + $0xe0] sm:$0xff]  ;;  %s690_s18 = scalar_lea.vmem %s529_s17, 128  ;;  %p695_p2 = scmp.lt.s32.totalorder %s529_s17, %s529_s17 }
  0x2a   :  { %579 = vmatpush3.msra.mxu1 %v357_v6  ;;  %545 = vmatprep.subr.mxu0 %v340_v7  ;;  %v370_v18 = vld [vmem:[#allocation9 + $0x1e0] sm:$0xff]  ;;  %v337_v22 = vld [vmem:[#allocation9 + $0xd8] sm:$0xff]  ;;  %v336_v26 = vld [vmem:[#allocation9 + $0xd0] sm:$0xff]  ;;  %v70_v6 = vlaneseq  ;;  %p691_p1 = scmp.ne.s32.totalorder %s529_s17, %s690_s18  ;;  %p696_p3 = scmp.lt.s32.totalorder %s690_s18, %s690_s18 }
  0x2b   :  { %580 = vmatprep.subr.mxu1 %v372_v8  ;;  %625 = vset.pattern.permute.xlu0 %v723_v11  ;;  %v322_v19 = vld [vmem:[#allocation9 + $0x60] sm:$0xff]  ;;  %v369_v23 = vld [vmem:[#allocation9 + $0x1d8] sm:$0xff]  ;;  %v368_v27 = vld [vmem:[#allocation9 + $0x1d0] sm:$0xff] }
  0x2c   :  { %627 = vset.pattern.permute.xlu1 %v724_v12  ;;  %91 = vperm.xlu0 %625, %v60_v2   ;;  %v354_v20 = vld [vmem:[#allocation9 + $0x160] sm:$0xff]  ;;  %v321_v24 = vld [vmem:[#allocation9 + $0x58] sm:$0xff]  ;;  %v320_v28 = vld [vmem:[#allocation9 + $0x50] sm:$0xff]  ;;  %v71_v7 = vshrl.u32 %v70_v6, 7  ;;  %v233_v8 = vand.u32 127, %v70_v6  ;;  %p697_p4 = por %p696_p3, %p695_p2 }
  0x2d   :  { %147 = vperm.xlu1 %627, %v60_v2   ;;  %546 = vmatpush3.msra.mxu0 %v324_v9  ;;  %v353_v25 = vld [vmem:[#allocation9 + $0x158] sm:$0xff]  ;;  %v352_v29 = vld [vmem:[#allocation9 + $0x150] sm:$0xff]  ;;  %v335_v30 = vld [vmem:[#allocation9 + $0xc8] sm:$0xff] }
  0x2e   :  { %581 = vmatpush3.msra.mxu1 %v356_v10  ;;  %547 = vmatprep.subr.mxu0 %v339_v13  ;;  %v367_v31 = vld [vmem:[#allocation9 + $0x1c8] sm:$0xff]  ;;  %v334_v34 = vld [vmem:[#allocation9 + $0xc0] sm:$0xff]  ;;  %v333_v38 = vld [vmem:[#allocation9 + $0xb8] sm:$0xff]  ;;  %v234_v9 = vadd.s32 128, %v233_v8  ;;  %v237_v10 = vmul.u32 512, %v71_v7  ;;  %v236_v11 = vadd.s32 384, %v233_v8  ;;  %v245_v13 = vstv %s244_s13  ;;  %p698_p5 = pnand %p697_p4, %p691_p1 }
  0x2f   :  { %582 = vmatprep.subr.mxu1 %v371_v14  ;;  %548 = vmatpush3.msra.mxu0 %v323_v15  ;;  %v319_v32 = vld [vmem:[#allocation9 + $0x48] sm:$0xff]  ;;  %v366_v35 = vld [vmem:[#allocation9 + $0x1c0] sm:$0xff]  ;;  %v365_v39 = vld [vmem:[#allocation9 + $0x1b8] sm:$0xff] }
  0x30   :  { %583 = vmatpush3.msra.mxu1 %v355_v16  ;;  %549 = vmatprep.subr.mxu0 %v338_v17  ;;  %v351_v33 = vld [vmem:[#allocation9 + $0x148] sm:$0xff]  ;;  %v318_v36 = vld [vmem:[#allocation9 + $0x40] sm:$0xff]  ;;  %v317_v40 = vld [vmem:[#allocation9 + $0x38] sm:$0xff]  ;;  %v241_v12 = vadd.s32 %v237_v10, %v234_v9  ;;  %v243_v14 = vadd.s32 %v237_v10, %v236_v11  ;;  %v240_v15 = vadd.s32 %v237_v10, %v233_v8  ;;  %v235_v16 = vadd.s32 256, %v233_v8 }
  0x31   :  { %628 = vset.pattern.permute.xlu1 %v725_v21  ;;  %584 = vmatprep.subr.mxu1 %v370_v18  ;;  %v350_v37 = vld [vmem:[#allocation9 + $0x140] sm:$0xff]  ;;  %v349_v41 = vld [vmem:[#allocation9 + $0x138] sm:$0xff]  ;;  %v332_v42 = vld [vmem:[#allocation9 + $0xb0] sm:$0xff] }
  0x32   :  { %175 = vperm.xlu1 %628, %v60_v2   ;;  %550 = vmatpush3.msra.mxu0 %v322_v19  ;;  %v364_v43 = vld [vmem:[#allocation9 + $0x1b0] sm:$0xff]  ;;  %v331_v46 = vld [vmem:[#allocation9 + $0xa8] sm:$0xff]  ;;  %v330_v50 = vld [vmem:[#allocation9 + $0xa0] sm:$0xff]  ;;  %v247_v17 = vadd.s32 %v245_v13, %v241_v12  ;;  %v249_v18 = vadd.s32 %v245_v13, %v243_v14  ;;  %v246_v19 = vadd.s32 %v245_v13, %v240_v15 }
  0x33   :  { %585 = vmatpush3.msra.mxu1 %v354_v20  ;;  %551 = vmatprep.subr.mxu0 %v337_v22  ;;  %v316_v44 = vld [vmem:[#allocation9 + $0x30] sm:$0xff]  ;;  %v363_v47 = vld [vmem:[#allocation9 + $0x1a8] sm:$0xff]  ;;  %v362_v51 = vld [vmem:[#allocation9 + $0x1a0] sm:$0xff]  ;;  %v242_v20 = vadd.s32 %v237_v10, %v235_v16 }
  0x34   :  { %586 = vmatprep.subr.mxu1 %v369_v23  ;;  %552 = vmatpush3.msra.mxu0 %v321_v24  ;;  %v348_v45 = vld [vmem:[#allocation9 + $0x130] sm:$0xff]  ;;  %v315_v48 = vld [vmem:[#allocation9 + $0x28] sm:$0xff]  ;;  %v314_v52 = vld [vmem:[#allocation9 + $0x20] sm:$0xff]  ;;  %v253_v22 = vshrl.u32 %v249_v18, 16  ;;  %v250_v23 = vshrl.u32 %v246_v19, 16 }
  0x35   :  { %587 = vmatpush3.msra.mxu1 %v353_v25  ;;  %553 = vmatprep.subr.mxu0 %v336_v26  ;;  %v347_v49 = vld [vmem:[#allocation9 + $0x128] sm:$0xff]  ;;  %v346_v53 = vld [vmem:[#allocation9 + $0x120] sm:$0xff]  ;;  %v329_v54 = vld [vmem:[#allocation9 + $0x98] sm:$0xff]  ;;  %v248_v24 = vadd.s32 %v245_v13, %v242_v20 }
  0x36   :  { %588 = vmatprep.subr.mxu1 %v368_v27  ;;  %554 = vmatpush3.msra.mxu0 %v320_v28  ;;  %v361_v55 = vld [vmem:[#allocation9 + $0x198] sm:$0xff]  ;;  %v328_v58 = vld [vmem:[#allocation9 + $0x90] sm:$0xff]  ;;  %v327_v62 = vld [vmem:[#allocation9 + $0x88] sm:$0xff]  ;;  %v257_v26 = vxor.u32 %v253_v22, %v249_v18  ;;  %v254_v27 = vxor.u32 %v250_v23, %v246_v19 }
  0x37   :  { %589 = vmatpush3.msra.mxu1 %v352_v29  ;;  %555 = vmatprep.subr.mxu0 %v335_v30  ;;  %v313_v56 = vld [vmem:[#allocation9 + $0x18] sm:$0xff]  ;;  %v360_v59 = vld [vmem:[#allocation9 + $0x190] sm:$0xff]  ;;  %v359_v63 = vld [vmem:[#allocation9 + $0x188] sm:$0xff]  ;;  %v252_v28 = vshrl.u32 %v248_v24, 16 }
  0x38   :  { %590 = vmatprep.subr.mxu1 %v367_v31  ;;  %556 = vmatpush3.msra.mxu0 %v319_v32  ;;  %v345_v57 = vld [vmem:[#allocation9 + $0x118] sm:$0xff]  ;;  %v312_v60 = vld [vmem:[#allocation9 + $0x10] sm:$0xff]  ;;  %v311_v0 = vld [vmem:[#allocation9 + $0x8] sm:$0xff]  ;;  %v261_v30 = vmul.u32 2146121005, %v257_v26 }
  0x39   :  { %591 = vmatpush3.msra.mxu1 %v351_v33  ;;  %557 = vmatprep.subr.mxu0 %v334_v34  ;;  %v344_v61 = vld [vmem:[#allocation9 + $0x110] sm:$0xff]  ;;  %v343_v1 = vld [vmem:[#allocation9 + $0x108] sm:$0xff]  ;;  %v326_v2 = vld [vmem:[#allocation9 + $0x80] sm:$0xff]  ;;  %v258_v31 = vmul.u32 2146121005, %v254_v27  ;;  %v256_v32 = vxor.u32 %v252_v28, %v248_v24 }
  0x3a   :  { %592 = vmatprep.subr.mxu1 %v366_v35  ;;  %558 = vmatpush3.msra.mxu0 %v318_v36  ;;  %v358_v3 = vld [vmem:[#allocation9 + $0x180] sm:$0xff]  ;;  %v265_v34 = vshrl.u32 %v261_v30, 15 }
  0x3b   :  { %593 = vmatpush3.msra.mxu1 %v350_v37  ;;  %559 = vmatprep.subr.mxu0 %v333_v38  ;;  %v310_v4 = vld [vmem:[#allocation9] sm:$0xff]  ;;  %v262_v35 = vshrl.u32 %v258_v31, 15  ;;  %v260_v36 = vmul.u32 2146121005, %v256_v32 }
  0x3c   :  { %594 = vmatprep.subr.mxu1 %v365_v39  ;;  %560 = vmatpush3.msra.mxu0 %v317_v40  ;;  %v342_v5 = vld [vmem:[#allocation9 + $0x100] sm:$0xff]  ;;  %v269_v38 = vxor.u32 %v265_v34, %v261_v30 }
  0x3d   :  { %595 = vmatpush3.msra.mxu1 %v349_v41  ;;  %561 = vmatprep.subr.mxu0 %v332_v42  ;;  %v266_v39 = vxor.u32 %v262_v35, %v258_v31  ;;  %v264_v40 = vshrl.u32 %v260_v36, 15  ;;  %v776_v41 = vsub.s32 0, %v71_v7  ;;  %v778_v42 = vsub.s32 2, %v71_v7 }
  0x3e   :  { %596 = vmatprep.subr.mxu1 %v364_v43  ;;  %562 = vmatpush3.msra.mxu0 %v316_v44  ;;  %v780_v43 = vsub.s32 1, %v71_v7  ;;  %v782_v44 = vld [vmem:[#allocation7] sm:$0x1f] }
  0x3f   :  { %597 = vmatpush3.msra.mxu1 %v348_v45  ;;  %563 = vmatprep.subr.mxu0 %v331_v46  ;;  %v784_v45 = vld [vmem:[#allocation7 + $0x8] sm:$0x1f]  ;;  %v786_v46 = vsub.s32 3, %v71_v7 }
  0x40   :  { %598 = vmatprep.subr.mxu1 %v363_v47  ;;  %564 = vmatpush3.msra.mxu0 %v315_v48  ;;  %v788_v47 = vld [vmem:[#allocation7 + $0x10] sm:$0x1f]  ;;  %v790_v48 = vld [vmem:[#allocation7 + $0x18] sm:$0x1f] }
  0x41   :  { %599 = vmatpush3.msra.mxu1 %v347_v49  ;;  %565 = vmatprep.subr.mxu0 %v330_v50  ;;  %v792_v50 = vsub.s32 4, %v71_v7  ;;  %v153_v9 = vrot.slane %v782_v44, %v786_v46  ;;  %v157_v10 = vrot.slane %v784_v45, %v786_v46  ;;  %v161_v11 = vrot.slane %v788_v47, %v786_v46 }
  0x42   :  { %600 = vmatprep.subr.mxu1 %v362_v51  ;;  %566 = vmatpush3.msra.mxu0 %v314_v52  ;;  %v273_v51 = vmul.u32 2221713035, %v269_v38  ;;  %v270_v52 = vmul.u32 2221713035, %v266_v39  ;;  %v165_v12 = vrot.slane %v790_v48, %v786_v46 }
  0x43   :  { %601 = vmatpush3.msra.mxu1 %v346_v53  ;;  %567 = vmatprep.subr.mxu0 %v329_v54  ;;  %v794_v53 = vxor.u32 %v264_v40, %v260_v36  ;;  %v73_v54 = vrot.slane %v782_v44, %v776_v41  ;;  %v181_v13 = vrot.slane %v782_v44, %v792_v50 }
  0x44   :  { %602 = vmatprep.subr.mxu1 %v361_v55  ;;  %568 = vmatpush3.msra.mxu0 %v313_v56  ;;  %v77_v55 = vrot.slane %v784_v45, %v776_v41  ;;  %v125_v56 = vrot.slane %v782_v44, %v778_v42  ;;  %v277_v6 = vshrl.u32 %v273_v51, 16  ;;  %v274_v7 = vshrl.u32 %v270_v52, 16 }
  0x45   :  { %603 = vmatpush3.msra.mxu1 %v345_v57  ;;  %569 = vmatprep.subr.mxu0 %v328_v58  ;;  %v97_v57 = vrot.slane %v782_v44, %v780_v43  ;;  %v81_v58 = vrot.slane %v788_v47, %v776_v41  ;;  %v272_v8 = vmul.u32 2221713035, %v794_v53  ;;  %v185_v14 = vrot.slane %v784_v45, %v792_v50 }
  0x46   :  { %604 = vmatprep.subr.mxu1 %v360_v59  ;;  %570 = vmatpush3.msra.mxu0 %v312_v60  ;;  %v85_v59 = vrot.slane %v790_v48, %v776_v41  ;;  %v129_v60 = vrot.slane %v784_v45, %v778_v42  ;;  %v189_v15 = vrot.slane %v788_v47, %v792_v50 }
  0x47   :  { %605 = vmatpush3.msra.mxu1 %v344_v61  ;;  %571 = vmatprep.subr.mxu0 %v327_v62  ;;  %v133_v61 = vrot.slane %v788_v47, %v778_v42  ;;  %v137_v62 = vrot.slane %v790_v48, %v778_v42  ;;  %v193_v16 = vrot.slane %v790_v48, %v792_v50  ;;  %v276_v24 = vshrl.u32 %v272_v8, 16 }
  0x48   :  { %606 = vmatprep.subr.mxu1 %v359_v63  ;;  %572 = vmatpush3.msra.mxu0 %v311_v0  ;;  %v101_v63 = vrot.slane %v784_v45, %v780_v43  ;;  %v105_v0 = vrot.slane %v788_v47, %v780_v43  ;;  %v281_v22 = vxor.u32 %v277_v6, %v273_v51 }
  0x49   :  { %607 = vmatpush3.msra.mxu1 %v343_v1  ;;  %573 = vmatprep.subr.mxu0 %v326_v2  ;;  %v109_v1 = vrot.slane %v790_v48, %v780_v43  ;;  %v823_v2 = vld [vmem:[%s877_s3] sm:$0xf]  ;;  %v278_v23 = vxor.u32 %v274_v7, %v270_v52 }
  0x4a   :  { %608 = vmatprep.subr.mxu1 %v358_v3  ;;  %574 = vmatpush3.msra.mxu0 %v310_v4  ;;  %v215_v18 = vrot.slane %v823_v2, %v778_v42  ;;  %v211_v19 = vrot.slane %v823_v2, %v780_v43  ;;  %v219_v20 = vrot.slane %v823_v2, %v786_v46 }
  0x4b   :  { %609 = vmatpush3.msra.mxu1 %v342_v5  ;;  %629 = vset.pattern.permute.xlu0 %v725_v21  ;;  %v251_v21 = vshrl.u32 %v247_v17, 16 }
  0x4d   :  { %v255_v25 = vxor.u32 %v251_v21, %v247_v17  ;;  %v207_v17 = vrot.slane %v823_v2, %v776_v41 }
  0x4f   :  { %v259_v29 = vmul.u32 2146121005, %v255_v25 }
  0x51   :  { %v263_v33 = vshrl.u32 %v259_v29, 15 }
  0x53   :  { %v267_v37 = vxor.u32 %v263_v33, %v259_v29 }
  0x55   :  { %v271_v49 = vmul.u32 2221713035, %v267_v37 }
  0x57   :  { %v275_v5 = vshrl.u32 %v271_v49, 16 }
  0x59   :  { %v279_v21 = vxor.u32 %v275_v5, %v271_v49 }
  0xa2   :  { %v68_v3 = vpop.permute.xlu0 %67  ;;  %v120_v4 = vpop.permute.xlu1 %119 }
  0xa3   :  { %v86_v25 = vmul.f32 %v73_v54, %v68_v3  ;;  %v87_v26 = vmul.f32 %v77_v55, %v68_v3  ;;  %v88_v27 = vmul.f32 %v81_v58, %v68_v3  ;;  %v89_v28 = vmul.f32 %v85_v59, %v68_v3 }
  0xa4   :  { %v138_v35 = vmul.f32 %v125_v56, %v120_v4  ;;  %v139_v36 = vmul.f32 %v129_v60, %v120_v4  ;;  %v140_v37 = vmul.f32 %v133_v61, %v120_v4  ;;  %v141_v38 = vmul.f32 %v137_v62, %v120_v4 }
  0xa5   :  { %v283_v60 = vand.u32 1, %v279_v21  ;;  %v285_v61 = vand.u32 1, %v281_v22  ;;  %v282_v62 = vand.u32 1, %v278_v23 }
  0xa7   :  { %v92_v29 = vpop.permute.xlu0 %91  ;;  %vm850_vm0 = vcmp.eq.s32.totalorder %v283_v60, 0  ;;  %vm854_vm1 = vcmp.eq.s32.totalorder %v285_v61, 0  ;;  %vm858_vm2 = vcmp.eq.s32.totalorder %v282_v62, 0 }
  0xa8   :  { %v148_v30 = vpop.permute.xlu1 %147  ;;  %v110_v31 = vmul.f32 %v97_v57, %v92_v29  ;;  %v111_v32 = vmul.f32 %v101_v63, %v92_v29  ;;  %v112_v33 = vmul.f32 %v105_v0, %v92_v29  ;;  %v113_v34 = vmul.f32 %v109_v1, %v92_v29 }
  0xa9   :  { %v166_v43 = vmul.f32 %v153_v9, %v148_v30  ;;  %v167_v44 = vmul.f32 %v157_v10, %v148_v30  ;;  %v168_v45 = vmul.f32 %v161_v11, %v148_v30  ;;  %v169_v46 = vmul.f32 %v165_v12, %v148_v30 }
  0xaa   :  { %v114_v39 = vadd.f32 %v110_v31, %v86_v25  ;;  %v115_v40 = vadd.f32 %v111_v32, %v87_v26  ;;  %v116_v41 = vadd.f32 %v112_v33, %v88_v27  ;;  %v117_v42 = vadd.f32 %v113_v34, %v89_v28  ;;  %v538_v26 = vld [vmem:[%s879_s5] ss:$0 sm:$0xff] }
  0xab   :  { %v280_v63 = vxor.u32 %v276_v24, %v272_v8 }
  0xac   :  { %v142_v47 = vadd.f32 %v138_v35, %v114_v39  ;;  %v143_v48 = vadd.f32 %v139_v36, %v115_v40  ;;  %v144_v49 = vadd.f32 %v140_v37, %v116_v41  ;;  %v145_v50 = vadd.f32 %v141_v38, %v117_v42 }
  0xad   :  { %v176_v51 = vpop.permute.xlu1 %175  ;;  %v284_v8 = vand.u32 1, %v280_v63 }
  0xae   :  { %v194_v52 = vmul.f32 %v181_v13, %v176_v51  ;;  %v195_v53 = vmul.f32 %v185_v14, %v176_v51  ;;  %v196_v54 = vmul.f32 %v189_v15, %v176_v51  ;;  %v197_v55 = vmul.f32 %v193_v16, %v176_v51 }
  0xaf   :  { %v170_v56 = vadd.f32 %v166_v43, %v142_v47  ;;  %v171_v57 = vadd.f32 %v167_v44, %v143_v48  ;;  %v172_v58 = vadd.f32 %v168_v45, %v144_v49  ;;  %v173_v59 = vadd.f32 %v169_v46, %v145_v50 }
  0xb0   :  { %vm288_vm7 = vcmp.eq.s32.totalorder %v284_v8, 0 }
  0xb1   :  { %v198_v0 = vadd.f32 %v194_v52, %v170_v56  ;;  %v199_v1 = vadd.f32 %v195_v53, %v171_v57  ;;  %v200_v2 = vadd.f32 %v196_v54, %v172_v58  ;;  %v201_v3 = vadd.f32 %v197_v55, %v173_v59 }
  0xb3   :  { %v224_v4 = vadd.f32 %v207_v17, %v198_v0  ;;  %v226_v5 = vadd.f32 %v215_v18, %v200_v2  ;;  %v225_v6 = vadd.f32 %v211_v19, %v199_v1  ;;  %v227_v7 = vadd.f32 %v219_v20, %v201_v3 }
  0xb5   :  { %vm291_vm3 = vcmp.gt.f32.partialorder %v225_v6, 0.0  ;;  %v295_v12 = vmul.f32 2.0, %v225_v6  ;;  %v299_v13 = vmul.f32 0.02, %v225_v6  ;;  %vm293_vm4 = vcmp.gt.f32.partialorder %v227_v7, 0.0 }
  0xb6   :  { %v297_v14 = vmul.f32 2.0, %v227_v7  ;;  %v301_v15 = vmul.f32 0.02, %v227_v7  ;;  %vm290_vm5 = vcmp.gt.f32.partialorder %v224_v4, 0.0  ;;  %v294_v16 = vmul.f32 2.0, %v224_v4 }
  0xb7   :  { %v303_v17 = vsel %vm291_vm3, %v295_v12, %v299_v13  ;;  %v298_v18 = vmul.f32 0.02, %v224_v4  ;;  %vm292_vm6 = vcmp.gt.f32.partialorder %v226_v5, 0.0  ;;  %v296_v19 = vmul.f32 2.0, %v226_v5 }
  0xb8   :  { %539 = vmatprep.mubr.msk.f32.mxu0 %vm850_vm0, %v303_v17  ;;  %v305_v20 = vsel %vm293_vm4, %v297_v14, %v301_v15  ;;  %v300_v21 = vmul.f32 0.02, %v226_v5 }
  0xb9   :  { %541 = vmatprep.mubr.msk.f32.mxu1 %vm854_vm1, %v305_v20  ;;  %v302_v22 = vsel %vm290_vm5, %v294_v16, %v298_v18 }
  0xba   :  { %540 = vmatmul.mubr.msk.f32.vlgmr.msra.gmra.mxu0 %vm858_vm2, %v302_v22  ;;  %v304_v23 = vsel %vm292_vm6, %v296_v19, %v300_v21 }
  0xbb   :  { %542 = vmatmul.mubr.msk.f32.vlgmr.msra.gmra.mxu1 %vm288_vm7, %v304_v23 }
 0x17a   :  { %v575_v24 = vpop.f32.mrf.mxu0 }
 0x17b   :  { %v610_v25 = vpop.f32.mrf.mxu1 }
 0x17c   :  { %v576_v27 = vpop.f32.mrf.mxu0 }
 0x17d   :  { %v577_v28 = vadd.f32 %v576_v27, %v575_v24  ;;  %v611_v29 = vpop.f32.mrf.mxu1 }
 0x17e   :  { %v612_v31 = vadd.f32 %v611_v29, %v610_v25 }
 0x17f   :  { %v448_v30 = vadd.f32 %v577_v28, %v538_v26 }
 0x181   :  { %v518_v32 = vadd.f32 %v612_v31, %v448_v30 }
 0x183   :  { %521 = vst [vmem:[#allocation10] sm:$0xff] %v518_v32 }
 0x184   :  { %701 = shalt.err (!%p698_p5)
}
 0x185   :  { %531 = dma.vmem_to_hbm [thread:$0]  %s529_s17, 128, %s880_s6, [#allocation6]  }
 0x186   :  { %714 = dma.done.wait [#allocation6], 128  }
 0x187   :  { %715 = vsyncadd [#allocation6], 4294967168 }
 0x188   :  { %535 = vsyncpa [#allocation5], 1 }
 0x189   :  { %536 = vsyncpa [#allocation8], 1 }
 0x18a   :  { %537 = vsyncpa [#allocation6], 1 }

</bundles_post_ra>
